<compile_context>
chip_gen: v7x
topology: tpu7x:2x2x1
jax: 0.10.0
libtpu: 0.0.40
codegen_flags: <defaults>
</compile_context>

<pallas_src>
import jax
import jax.numpy as jnp
from jax.experimental import pallas as pl
from jax.experimental.pallas import tpu as pltpu

LN_EPS = 1e-5


def _round_up(x, m):
    return ((x + m - 1) // m) * m


def _residual_block_kernel(x_ref, w1_ref, w2_ref, vec_ref, o_ref):
    """x_ref: (TB, D) f32; w1_ref/w2_ref: (D, D) bf16 (pre-transposed, x @ W);
    vec_ref: (8, D) f32 = [fn_g, fn_b, ln1_g, ln1_b, ln2_g, ln2_b, b1, b2]."""

    def layer_norm(h, gamma, beta):
        mu = jnp.mean(h, axis=-1, keepdims=True)
        var = jnp.mean((h - mu) * (h - mu), axis=-1, keepdims=True)
        return (h - mu) * jax.lax.rsqrt(var + LN_EPS) * gamma + beta

    vecs = vec_ref[...]                     # (8, D) f32, resident across grid steps
    fn_g, fn_b = vecs[0:1], vecs[1:2]
    ln1_g, ln1_b = vecs[2:3], vecs[3:4]
    ln2_g, ln2_b = vecs[4:5], vecs[5:6]
    b1, b2 = vecs[6:7], vecs[7:8]

    # feature_norm (f32 math)
    x = layer_norm(x_ref[...].astype(jnp.float32), fn_g, fn_b)
    residual = x

    # fc1 -> ln1 -> relu  (bf16 MXU inputs, f32 accumulation, f32 LayerNorm)
    h = jnp.dot(x.astype(jnp.bfloat16), w1_ref[...],
                preferred_element_type=jnp.float32) + b1
    h = jnp.maximum(layer_norm(h, ln1_g, ln1_b), 0.0)

    # fc2 -> ln2
    h = jnp.dot(h.astype(jnp.bfloat16), w2_ref[...],
                preferred_element_type=jnp.float32) + b2
    h = layer_norm(h, ln2_g, ln2_b)

    # residual add + relu
    o_ref[...] = jnp.maximum(h + residual, 0.0).astype(o_ref.dtype)


def residual_block(x, params, *, block_b=256):
    """x: (B, D) float32; params: dict from init_params()."""
    B, D = x.shape

    # Batch tile: multiple of 8 sublanes, as large as requested / needed.
    tb = min(block_b, _round_up(B, 8))
    tb = max(8, (tb // 8) * 8)
    Bp = _round_up(B, tb)
    if Bp != B:
        x = jnp.pad(x, ((0, Bp - B), (0, 0)))
    grid = (Bp // tb,)

    # Per-feature vectors packed into one resident (8, D) slab.
    vec_slab = jnp.concatenate(
        [params["fn_g"], params["fn_b"],
         params["ln1_g"], params["ln1_b"],
         params["ln2_g"], params["ln2_b"],
         params["b1"], params["b2"]],
        axis=0).astype(jnp.float32)

    w1 = params["w1_t"].astype(jnp.bfloat16)
    w2 = params["w2_t"].astype(jnp.bfloat16)

    # Scoped VMEM budget: double-buffered x/out tiles + (conservatively) double-buffered
    # bf16 weights + vector slab + slack.
    # TODO(synk): for very large D (>~4K on v7x's 64 MiB VMEM) stream W1/W2 as N/K panels
    # from HBM (memory_space=pl.ANY + emit_pipeline) instead of keeping them whole in VMEM.
    vmem_bytes = (
        2 * 2 * tb * D * 4        # x + out tiles, double-buffered, f32
        + 2 * 2 * D * D * 2       # w1 + w2, bf16, double-buffered (conservative)
        + 2 * 8 * D * 4           # vector slab
        + (2 << 20)               # slack for compiler internals
    )
    vmem_bytes = min(max(vmem_bytes, 16 * 1024 * 1024), 64 * 1024 * 1024)

    out = pl.pallas_call(
        _residual_block_kernel,
        out_shape=jax.ShapeDtypeStruct((Bp, D), x.dtype),
        grid=grid,
        in_specs=[
            pl.BlockSpec((tb, D), lambda i: (i, 0)),   # x: tiled over batch
            pl.BlockSpec((D, D), lambda i: (0, 0)),    # w1: VMEM-resident
            pl.BlockSpec((D, D), lambda i: (0, 0)),    # w2: VMEM-resident
            pl.BlockSpec((8, D), lambda i: (0, 0)),    # packed vectors: resident
        ],
        out_specs=pl.BlockSpec((tb, D), lambda i: (i, 0)),
        compiler_params=pltpu.CompilerParams(
            dimension_semantics=("parallel",),
            vmem_limit_bytes=vmem_bytes,
        ),
    )(x, w1, w2, vec_slab)

    return out[:B] if Bp != B else out


def init_params(key, input_dim):
    """Matches the PyTorch module's init_weights: xavier_uniform_ for Linear weights,
    zero biases, LayerNorm gamma=1 / beta=0.  Weights stored pre-transposed (in, out)
    and in bf16 (f32 master copies kept for the reference)."""
    k1, k2 = jax.random.split(key)
    bound = (6.0 / (input_dim + input_dim)) ** 0.5  # xavier uniform for square weight
    # PyTorch Linear weight is (out, in); we store the transpose (in, out) for x @ W.
    w1 = jax.random.uniform(k1, (input_dim, input_dim), jnp.float32, -bound, bound)
    w2 = jax.random.uniform(k2, (input_dim, input_dim), jnp.float32, -bound, bound)
    ones = jnp.ones((1, input_dim), jnp.float32)
    zeros = jnp.zeros((1, input_dim), jnp.float32)
    return dict(
        w1_t=w1.T, b1=zeros,
        w2_t=w2.T, b2=zeros,
        fn_g=ones, fn_b=zeros,
        ln1_g=ones, ln1_b=zeros,
        ln2_g=ones, ln2_b=zeros,
    )


def residual_block_ref(x, p):
    """Pure-JAX f32 reference for sanity checking."""
    def ln(h, g, b):
        mu = jnp.mean(h, axis=-1, keepdims=True)
        var = jnp.mean((h - mu) ** 2, axis=-1, keepdims=True)
        return (h - mu) / jnp.sqrt(var + LN_EPS) * g + b

    x = ln(x, p["fn_g"], p["fn_b"])
    res = x
    out = x @ p["w1_t"].astype(jnp.float32) + p["b1"]
    out = jax.nn.relu(ln(out, p["ln1_g"], p["ln1_b"]))
    out = out @ p["w2_t"].astype(jnp.float32) + p["b2"]
    out = ln(out, p["ln2_g"], p["ln2_b"])
    return jax.nn.relu(out + res)


if __name__ == "__main__":
    key = jax.random.PRNGKey(0)
    kx, kp = jax.random.split(key)

    batch, input_dim = 64, 128          # lane-dense feature dim (multiple of 128)
    x = jax.random.normal(kx, (batch, input_dim), jnp.float32)
    params = init_params(kp, input_dim)

    # block_b=16 -> grid of 4 batch tiles, exercises the pipelined grid path.
    out = residual_block(x, params, block_b=16)
    out = jax.block_until_ready(out)

    ref = residual_block_ref(x, params)
    assert out.shape == (batch, input_dim)
    # bf16 MXU inputs vs. f32 reference: looser tolerance.
    assert jnp.allclose(out, ref, atol=2e-2, rtol=2e-2), "mismatch vs reference"

    print("KERNEL_OK")
</pallas_src>

<mosaic_0001>
module attributes {stable_mosaic.version = 11 : i64} {
  func.func @_residual_block_kernel(%arg0: i32, %arg1: memref<16x128xf32, #tpu.memory_space<vmem>>, %arg2: memref<128x128xbf16, #tpu.memory_space<vmem>>, %arg3: memref<128x128xbf16, #tpu.memory_space<vmem>>, %arg4: memref<8x128xf32, #tpu.memory_space<vmem>>, %arg5: memref<16x128xf32, #tpu.memory_space<vmem>>) attributes {dimension_semantics = [#tpu.dimension_semantics<parallel>], iteration_bounds = array<i64: 4>, scalar_prefetch = 0 : i64, scratch_operands = 0 : i64, tpu.core_type = #tpu.core_type<tc>, window_params = [{transform_indices = @transform_0, window_bounds = array<i64: 16, 128>}, {pipeline_mode = #tpu.pipeline_mode<synchronous>, transform_indices = @transform_1, window_bounds = array<i64: 128, 128>}, {pipeline_mode = #tpu.pipeline_mode<synchronous>, transform_indices = @transform_2, window_bounds = array<i64: 128, 128>}, {pipeline_mode = #tpu.pipeline_mode<synchronous>, transform_indices = @transform_3, window_bounds = array<i64: 8, 128>}, {transform_indices = @transform_4, window_bounds = array<i64: 16, 128>}]} {
    %c0 = arith.constant 0 : index
    %c0_0 = arith.constant 0 : index
    %0 = vector.load %arg4[%c0, %c0_0] : memref<8x128xf32, #tpu.memory_space<vmem>>, vector<8x128xf32>
    %1 = vector.extract_strided_slice %0 {offsets = [0, 0], sizes = [1, 128], strides = [1, 1]} : vector<8x128xf32> to vector<1x128xf32>
    %2 = vector.extract_strided_slice %0 {offsets = [1, 0], sizes = [1, 128], strides = [1, 1]} : vector<8x128xf32> to vector<1x128xf32>
    %3 = vector.extract_strided_slice %0 {offsets = [2, 0], sizes = [1, 128], strides = [1, 1]} : vector<8x128xf32> to vector<1x128xf32>
    %4 = vector.extract_strided_slice %0 {offsets = [3, 0], sizes = [1, 128], strides = [1, 1]} : vector<8x128xf32> to vector<1x128xf32>
    %5 = vector.extract_strided_slice %0 {offsets = [4, 0], sizes = [1, 128], strides = [1, 1]} : vector<8x128xf32> to vector<1x128xf32>
    %6 = vector.extract_strided_slice %0 {offsets = [5, 0], sizes = [1, 128], strides = [1, 1]} : vector<8x128xf32> to vector<1x128xf32>
    %7 = vector.extract_strided_slice %0 {offsets = [6, 0], sizes = [1, 128], strides = [1, 1]} : vector<8x128xf32> to vector<1x128xf32>
    %8 = vector.extract_strided_slice %0 {offsets = [7, 0], sizes = [1, 128], strides = [1, 1]} : vector<8x128xf32> to vector<1x128xf32>
    %c0_1 = arith.constant 0 : index
    %c0_2 = arith.constant 0 : index
    %9 = vector.load %arg1[%c0_1, %c0_2] : memref<16x128xf32, #tpu.memory_space<vmem>>, vector<16x128xf32>
    %cst = arith.constant dense<0.000000e+00> : vector<16xf32>
    %10 = vector.multi_reduction <add>, %9, %cst [1] : vector<16x128xf32> to vector<16xf32>
    %11 = vector.shape_cast %10 : vector<16xf32> to vector<16x1xf32>
    %cst_3 = arith.constant 1.280000e+02 : f32
    %12 = vector.broadcast %cst_3 : f32 to vector<16x1xf32>
    %13 = arith.divf %11, %12 : vector<16x1xf32>
    %14 = vector.broadcast %13 : vector<16x1xf32> to vector<16x128xf32>
    %15 = arith.subf %9, %14 : vector<16x128xf32>
    %16 = vector.broadcast %13 : vector<16x1xf32> to vector<16x128xf32>
    %17 = arith.subf %9, %16 : vector<16x128xf32>
    %18 = arith.mulf %15, %17 : vector<16x128xf32>
    %cst_4 = arith.constant dense<0.000000e+00> : vector<16xf32>
    %19 = vector.multi_reduction <add>, %18, %cst_4 [1] : vector<16x128xf32> to vector<16xf32>
    %20 = vector.shape_cast %19 : vector<16xf32> to vector<16x1xf32>
    %cst_5 = arith.constant 1.280000e+02 : f32
    %21 = vector.broadcast %cst_5 : f32 to vector<16x1xf32>
    %22 = arith.divf %20, %21 : vector<16x1xf32>
    %23 = vector.broadcast %13 : vector<16x1xf32> to vector<16x128xf32>
    %24 = arith.subf %9, %23 : vector<16x128xf32>
    %cst_6 = arith.constant 9.99999974E-6 : f32
    %25 = vector.broadcast %cst_6 : f32 to vector<16x1xf32>
    %26 = arith.addf %22, %25 : vector<16x1xf32>
    %27 = math.rsqrt %26 : vector<16x1xf32>
    %28 = vector.broadcast %27 : vector<16x1xf32> to vector<16x128xf32>
    %29 = arith.mulf %24, %28 : vector<16x128xf32>
    %30 = vector.broadcast %1 : vector<1x128xf32> to vector<16x128xf32>
    %31 = arith.mulf %29, %30 : vector<16x128xf32>
    %32 = vector.broadcast %2 : vector<1x128xf32> to vector<16x128xf32>
    %33 = arith.addf %31, %32 : vector<16x128xf32>
    %34 = arith.truncf %33 : vector<16x128xf32> to vector<16x128xbf16>
    %c0_7 = arith.constant 0 : index
    %c0_8 = arith.constant 0 : index
    %35 = vector.load %arg2[%c0_7, %c0_8] : memref<128x128xbf16, #tpu.memory_space<vmem>>, vector<128x128xbf16>
    %cst_9 = arith.constant dense<0.000000e+00> : vector<16x128xf32>
    %36 = tpu.matmul %34, %35, %cst_9 {dimension_numbers = #tpu.dot_dimension_numbers<[1], [0], [0], [1], [0, 0, 1, 1], [], []>} : vector<16x128xbf16>, vector<128x128xbf16>, vector<16x128xf32> -> vector<16x128xf32>
    %37 = vector.broadcast %7 : vector<1x128xf32> to vector<16x128xf32>
    %38 = arith.addf %36, %37 : vector<16x128xf32>
    %cst_10 = arith.constant dense<0.000000e+00> : vector<16xf32>
    %39 = vector.multi_reduction <add>, %38, %cst_10 [1] : vector<16x128xf32> to vector<16xf32>
    %40 = vector.shape_cast %39 : vector<16xf32> to vector<16x1xf32>
    %cst_11 = arith.constant 1.280000e+02 : f32
    %41 = vector.broadcast %cst_11 : f32 to vector<16x1xf32>
    %42 = arith.divf %40, %41 : vector<16x1xf32>
    %43 = vector.broadcast %42 : vector<16x1xf32> to vector<16x128xf32>
    %44 = arith.subf %38, %43 : vector<16x128xf32>
    %45 = vector.broadcast %42 : vector<16x1xf32> to vector<16x128xf32>
    %46 = arith.subf %38, %45 : vector<16x128xf32>
    %47 = arith.mulf %44, %46 : vector<16x128xf32>
    %cst_12 = arith.constant dense<0.000000e+00> : vector<16xf32>
    %48 = vector.multi_reduction <add>, %47, %cst_12 [1] : vector<16x128xf32> to vector<16xf32>
    %49 = vector.shape_cast %48 : vector<16xf32> to vector<16x1xf32>
    %cst_13 = arith.constant 1.280000e+02 : f32
    %50 = vector.broadcast %cst_13 : f32 to vector<16x1xf32>
    %51 = arith.divf %49, %50 : vector<16x1xf32>
    %52 = vector.broadcast %42 : vector<16x1xf32> to vector<16x128xf32>
    %53 = arith.subf %38, %52 : vector<16x128xf32>
    %cst_14 = arith.constant 9.99999974E-6 : f32
    %54 = vector.broadcast %cst_14 : f32 to vector<16x1xf32>
    %55 = arith.addf %51, %54 : vector<16x1xf32>
    %56 = math.rsqrt %55 : vector<16x1xf32>
    %57 = vector.broadcast %56 : vector<16x1xf32> to vector<16x128xf32>
    %58 = arith.mulf %53, %57 : vector<16x128xf32>
    %59 = vector.broadcast %3 : vector<1x128xf32> to vector<16x128xf32>
    %60 = arith.mulf %58, %59 : vector<16x128xf32>
    %61 = vector.broadcast %4 : vector<1x128xf32> to vector<16x128xf32>
    %62 = arith.addf %60, %61 : vector<16x128xf32>
    %cst_15 = arith.constant 0.000000e+00 : f32
    %63 = vector.broadcast %cst_15 : f32 to vector<16x128xf32>
    %64 = arith.maximumf %62, %63 : vector<16x128xf32>
    %65 = arith.truncf %64 : vector<16x128xf32> to vector<16x128xbf16>
    %c0_16 = arith.constant 0 : index
    %c0_17 = arith.constant 0 : index
    %66 = vector.load %arg3[%c0_16, %c0_17] : memref<128x128xbf16, #tpu.memory_space<vmem>>, vector<128x128xbf16>
    %cst_18 = arith.constant dense<0.000000e+00> : vector<16x128xf32>
    %67 = tpu.matmul %65, %66, %cst_18 {dimension_numbers = #tpu.dot_dimension_numbers<[1], [0], [0], [1], [0, 0, 1, 1], [], []>} : vector<16x128xbf16>, vector<128x128xbf16>, vector<16x128xf32> -> vector<16x128xf32>
    %68 = vector.broadcast %8 : vector<1x128xf32> to vector<16x128xf32>
    %69 = arith.addf %67, %68 : vector<16x128xf32>
    %cst_19 = arith.constant dense<0.000000e+00> : vector<16xf32>
    %70 = vector.multi_reduction <add>, %69, %cst_19 [1] : vector<16x128xf32> to vector<16xf32>
    %71 = vector.shape_cast %70 : vector<16xf32> to vector<16x1xf32>
    %cst_20 = arith.constant 1.280000e+02 : f32
    %72 = vector.broadcast %cst_20 : f32 to vector<16x1xf32>
    %73 = arith.divf %71, %72 : vector<16x1xf32>
    %74 = vector.broadcast %73 : vector<16x1xf32> to vector<16x128xf32>
    %75 = arith.subf %69, %74 : vector<16x128xf32>
    %76 = vector.broadcast %73 : vector<16x1xf32> to vector<16x128xf32>
    %77 = arith.subf %69, %76 : vector<16x128xf32>
    %78 = arith.mulf %75, %77 : vector<16x128xf32>
    %cst_21 = arith.constant dense<0.000000e+00> : vector<16xf32>
    %79 = vector.multi_reduction <add>, %78, %cst_21 [1] : vector<16x128xf32> to vector<16xf32>
    %80 = vector.shape_cast %79 : vector<16xf32> to vector<16x1xf32>
    %cst_22 = arith.constant 1.280000e+02 : f32
    %81 = vector.broadcast %cst_22 : f32 to vector<16x1xf32>
    %82 = arith.divf %80, %81 : vector<16x1xf32>
    %83 = vector.broadcast %73 : vector<16x1xf32> to vector<16x128xf32>
    %84 = arith.subf %69, %83 : vector<16x128xf32>
    %cst_23 = arith.constant 9.99999974E-6 : f32
    %85 = vector.broadcast %cst_23 : f32 to vector<16x1xf32>
    %86 = arith.addf %82, %85 : vector<16x1xf32>
    %87 = math.rsqrt %86 : vector<16x1xf32>
    %88 = vector.broadcast %87 : vector<16x1xf32> to vector<16x128xf32>
    %89 = arith.mulf %84, %88 : vector<16x128xf32>
    %90 = vector.broadcast %5 : vector<1x128xf32> to vector<16x128xf32>
    %91 = arith.mulf %89, %90 : vector<16x128xf32>
    %92 = vector.broadcast %6 : vector<1x128xf32> to vector<16x128xf32>
    %93 = arith.addf %91, %92 : vector<16x128xf32>
    %94 = arith.addf %93, %33 : vector<16x128xf32>
    %cst_24 = arith.constant 0.000000e+00 : f32
    %95 = vector.broadcast %cst_24 : f32 to vector<16x128xf32>
    %96 = arith.maximumf %94, %95 : vector<16x128xf32>
    %c0_25 = arith.constant 0 : index
    %c0_26 = arith.constant 0 : index
    %97 = vector.load %arg5[%c0_25, %c0_26] : memref<16x128xf32, #tpu.memory_space<vmem>>, vector<16x128xf32>
    tpu.vector_store %arg5[%c0_25, %c0_26], %96 {strides = array<i32>} : memref<16x128xf32, #tpu.memory_space<vmem>>, vector<16x128xf32>,
    return
  }
  func.func @transform_0(%arg0: i32) -> (i32, i32) {
    %c0_i32 = arith.constant 0 : i32
    %c0_i32_0 = arith.constant 0 : i32
    return %arg0, %c0_i32 : i32, i32
  }
  func.func @transform_1(%arg0: i32) -> (i32, i32) {
    %c0_i32 = arith.constant 0 : i32
    %c0_i32_0 = arith.constant 0 : i32
    %c0_i32_1 = arith.constant 0 : i32
    return %c0_i32, %c0_i32_0 : i32, i32
  }
  func.func @transform_2(%arg0: i32) -> (i32, i32) {
    %c0_i32 = arith.constant 0 : i32
    %c0_i32_0 = arith.constant 0 : i32
    %c0_i32_1 = arith.constant 0 : i32
    return %c0_i32, %c0_i32_0 : i32, i32
  }
  func.func @transform_3(%arg0: i32) -> (i32, i32) {
    %c0_i32 = arith.constant 0 : i32
    %c0_i32_0 = arith.constant 0 : i32
    %c0_i32_1 = arith.constant 0 : i32
    return %c0_i32, %c0_i32_0 : i32, i32
  }
  func.func @transform_4(%arg0: i32) -> (i32, i32) {
    %c0_i32 = arith.constant 0 : i32
    %c0_i32_0 = arith.constant 0 : i32
    return %arg0, %c0_i32 : i32, i32
  }
}

</mosaic_0001>

<bundles_post_ra>
// kernel: tpu_custom_call.1
= control target key start
LH: loop header
LB: loop body
LE: loop exit
PB: predicated region body
PF: predicated region fallthrough
CT: control target
= control target key end

     0   :  { %9 = vsyncpa [#allocation3], 0  ;;  %s1358_s0 = inlined_call_operand.hbm [shape: f32[64,128], index: 0, kind: input, shape index: {}]   ;;  %s1359_s1 = inlined_call_operand.hbm [shape: bf16[128,128], index: 1, kind: input, shape index: {}]   ;;  %s1360_s2 = inlined_call_operand.hbm [shape: bf16[128,128], index: 2, kind: input, shape index: {}]   ;;  %s1361_s3 = inlined_call_operand.vmem [shape: f32[8,128], index: 3, kind: input, shape index: {}]   ;;  %s1362_s4 = inlined_call_operand.hbm [shape: f32[64,128], index: 4, kind: output, shape index: {}]  }
   0x1   :  { %11 = vsyncpa [#allocation3 + $0x1], 0 }
   0x2   :  { %12 = vsyncpa [#allocation6], 0 }
   0x3   :  { %13 = vsyncpa [#allocation4], 0 }
   0x4   :  { %15 = vsyncpa [#allocation4 + $0x1], 0  ;;  %s1080_s15 = smov 0   ;;  %s1082_s16 = smov 0  }
   0x5   :  { %s1084_s17 = smov 0   ;;  %s1086_s18 = smov 0  }
   0x6 LB: > { %s1101_s19 = sadd.s32 4294967295, %s1041_s18   ;;  %s688_s20 = sadd.s32 4294967294, %s1041_s18   ;;  %s1041_s18 = sphi %s1086_s18, %s1381_s18   ;;  %s1037_s17 = sphi %s1084_s17, %s1380_s17   ;;  %s1033_s16 = sphi %s1082_s16, %s1379_s16   ;;  %s1029_s15 = sphi %s1080_s15, %s1378_s15  }
   0x7   : > { %p41_p0 = scmp.ne.s32.totalorder %s1033_s16, %s1029_s15  ;;  %p1363_p1 = scmp.eq.s32.totalorder %s1101_s19, 0 }
   0x8   : > { %p134_p3 = scmp.eq.s32.totalorder %s688_s20, 3  ;;  %p689_p5 = scmp.ge.s32.totalorder %s1041_s18, 1 }
   0x9   : > { %p1110_p4 = por %p1363_p1, %p41_p0  ;;  %p141_p7 = scmp.lt.s32.totalorder %s1041_s18, 5 }
   0xa   : > { %p1115_p6 = por %p134_p3, %p41_p0  ;;  %s1043_s24 = smov [#allocation5]  }
   0xb   : > { %s1366_s21 = scalar_select %p1110_p4, 1, 0 }
   0xc   : > { %s1367_s22 = scalar_select %p1115_p6, 1, 0 }
   0xd   : > { %p1120_p8 = pnand %p689_p5, %p141_p7  ;;  %s153_s25 = sshll.u32 %s1043_s24, 4  ;;  %s154_s25 = int_to_ptr.vmem [resolvable:$true] %s153_s25 }
   0xe   : > { %s1044_s27 = smov [#allocation7]   ;;  %s885_s5 = scalar_lea.hbm %s1359_s1, 1024 }
   0xf   : > { %s1368_s23 = scalar_select %p1120_p8, 1, 0 }
  0x10   : > { %p794_p9 = pneg %p1120_p8  ;;  %s166_s28 = sshll.u32 %s1044_s27, 4  ;;  %s1132_s28 = int_to_ptr.vmem [resolvable:$true] %s166_s28 }
  0x11   : > { %p886_p11 = scmp.ne.s32.totalorder %s1359_s1, %s885_s5  ;;  %p892_p3 = scmp.lt.u32.totalorder %s885_s5, %s1359_s1 }
  0x12   : > { %p1128_p10 = pnand %p794_p9, %p1363_p1 }
  0x14   : > { %p887_p12 = pneg %p1128_p10 }
  0x16   : > { %p888_p13 = pnand %p887_p12, %p886_p11 }
  0x18   : > { %p889_p0 = pneg %p888_p13 }
  0x1a   : > { %p894_p5 = pnand %p892_p3, %p889_p0 }
  0x1c   : > { %897 = shalt.err (!%p894_p5)
}
  0x1d   : > { %s898_s10 = scalar_lea.vmem %s154_s25, 1024  ;;  %p906_p2 = scmp.lt.s32.totalorder %s154_s25, %s154_s25 }
  0x1e   : > { %p899_p7 = scmp.ne.s32.totalorder %s154_s25, %s898_s10  ;;  %p907_p6 = scmp.lt.s32.totalorder %s898_s10, %s898_s10 }
  0x20   : > { %p901_p9 = pnand %p899_p7, %p887_p12  ;;  %p908_p4 = por %p907_p6, %p906_p2 }
  0x22   : > { %p902_p1 = pneg %p901_p9 }
  0x24   : > { %p909_p8 = pnand %p908_p4, %p902_p1 }
  0x26   : > { %912 = shalt.err (!%p909_p8)
}
  0x27   : > { %s1045_s11 = smov 64   ;;  %s1046_s12 = smov 4  }
  0x28   : > { %797 = dma.hbm_to_vmem [thread:$0]  (!%p1128_p10), %s1359_s1, 1024, %s154_s25, [#allocation6], %s1045_s11, %s1045_s11, %s1046_s12  }
  0x29   : > { %s913_s27 = scalar_lea.hbm %s1360_s2, 1024 }
  0x2a   : > { %p914_p11 = scmp.ne.s32.totalorder %s1360_s2, %s913_s27  ;;  %p920_p4 = scmp.lt.u32.totalorder %s913_s27, %s1360_s2 }
  0x2c   : > { %p916_p1 = pnand %p914_p11, %p887_p12 }
  0x2e   : > { %p917_p2 = pneg %p916_p1 }
  0x30   : > { %p922_p6 = pnand %p920_p4, %p917_p2 }
  0x32   : > { %925 = shalt.err (!%p922_p6)
}
  0x33   : > { %s926_s25 = scalar_lea.vmem %s1132_s28, 1024  ;;  %p934_p3 = scmp.lt.s32.totalorder %s1132_s28, %s1132_s28 }
  0x34   : > { %p927_p8 = scmp.ne.s32.totalorder %s1132_s28, %s926_s25  ;;  %p935_p5 = scmp.lt.s32.totalorder %s926_s25, %s926_s25 }
  0x36   : > { %p929_p13 = pnand %p927_p8, %p887_p12  ;;  %p936_p7 = por %p935_p5, %p934_p3 }
  0x38   : > { %p930_p0 = pneg %p929_p13 }
  0x3a   : > { %p937_p9 = pnand %p936_p7, %p930_p0 }
  0x3c   : > { %940 = shalt.err (!%p937_p9)
}
  0x3d   : > { %800 = dma.hbm_to_vmem [thread:$0]  (!%p1128_p10), %s1360_s2, 1024, %s1132_s28, [#allocation6], %s1045_s11, %s1045_s11, %s1046_s12  }
  0x3e   : > { %s1182_s9 = sadd.s32 1, %s1041_s18   ;;  %s28_s26 = sadd.s32 1, %s1037_s17 }
  0x3f   : > { %s25_s10 = ssub.s32 %s1041_s18, %s1182_s9  ;;  %p35_p12 = scmp.ne.s32.totalorder %s1037_s17, %s1033_s16 }
  0x40   : > { %p26_p11 = scmp.eq.s32.totalorder %s25_s10, 0  ;;  %p36_p1 = scmp.eq.s32.totalorder %s1041_s18, 0 }
  0x41   : > { %p1370_p2 = scmp.eq.s32.totalorder %s1101_s19, 3  ;;  %p811_p6 = scmp.lt.s32.totalorder %s1041_s18, 4 }
  0x42   : > { %s1198_s14 = scalar_select %p26_p11, %s1037_s17, %s28_s26  }
  0x43   : > { %p1192_p4 = por %p1370_p2, %p35_p12  ;;  %p37_p8 = por %p36_p1, %p35_p12 }
  0x44   : > { %s183_s20 = sand.u32 1, %s1037_s17   ;;  %s722_s28 = sshll.u32 %s1041_s18, 8 }
  0x45   : > { %s693_s24 = sshll.u32 %s183_s20, 4  ;;  %s1205_s27 = scalar_lea.hbm %s1358_s0, %s722_s28 }
  0x46   : > { %s187_s29 = scalar_lea.vmem [#allocation2], %s693_s24  ;;  %p1209_p10 = pnand %p811_p6, %p37_p8 }
  0x47   : > { %s194_s30 = sshll.u32 %s187_s29, 4  ;;  %s1213_s6 = scalar_lea.sflag [#allocation3], %s183_s20  ;;  %s1207_s30 = int_to_ptr.vmem [resolvable:$true] %s194_s30 }
  0x48   : > { %s941_s25 = scalar_lea.hbm %s1205_s27, 256  ;;  %p943_p0 = pneg %p1209_p10 }
  0x49   : > { %p942_p13 = scmp.ne.s32.totalorder %s1205_s27, %s941_s25  ;;  %s946_s26 = scalar_lea.hbm %s1358_s0, 1024 }
  0x4a   : > { %p947_p7 = scmp.lt.u32.totalorder %s1205_s27, %s1358_s0  ;;  %p948_p9 = scmp.lt.u32.totalorder %s946_s26, %s941_s25 }
  0x4b   : > { %p944_p3 = pnand %p943_p0, %p942_p13  ;;  %p950_p11 = scmp.lt.u32.totalorder %s941_s25, %s1205_s27 }
  0x4c   : > { %p949_p12 = por %p948_p9, %p947_p7 }
  0x4d   : > { %p945_p5 = pneg %p944_p3 }
  0x4e   : > { %p951_p1 = por %p950_p11, %p949_p12 }
  0x50   : > { %p952_p2 = pnand %p951_p1, %p945_p5 }
  0x52   : > { %955 = shalt.err (!%p952_p2)
}
  0x53   : > { %s956_s20 = scalar_lea.vmem %s1207_s30, 256  ;;  %s1047_s28 = smov [#allocation2]  }
  0x54   : > { %p957_p6 = scmp.ne.s32.totalorder %s1207_s30, %s956_s20  ;;  %s961_s11 = sshll.u32 %s1047_s28, 4  ;;  %s962_s11 = int_to_ptr.vmem [resolvable:$false] %s961_s11 }
  0x55   : > { %s963_s12 = scalar_lea.vmem %s962_s11, 512  ;;  %p964_p3 = scmp.lt.s32.totalorder %s1207_s30, %s962_s11 }
  0x56   : > { %p959_p8 = pnand %p957_p6, %p943_p0  ;;  %p965_p7 = scmp.lt.s32.totalorder %s963_s12, %s956_s20 }
  0x58   : > { %p960_p13 = pneg %p959_p8  ;;  %p966_p9 = por %p965_p7, %p964_p3 }
  0x5a   : > { %p967_p12 = pnand %p966_p9, %p960_p13 }
  0x5c   : > { %970 = shalt.err (!%p967_p12)
}
  0x5d   : > { %s1048_s29 = smov 128   ;;  %s1049_s25 = smov 8  }
  0x5e   : > { %804 = dma.hbm_to_vmem [thread:$0]  (!%p1209_p10), %s1205_s27, 256, %s1207_s30, %s1213_s6, %s1048_s29, %s1048_s29, %s1049_s25  }
  0x5f   : > { %p1373_p0 = scmp.ne.s32.totalorder %s1368_s23, 0 }
  0x60   : > { %s1244_s7 = sand.u32 (!%p1373_p0), 1, %s1033_s16   ;;  %p1374_p5 = scmp.ne.s32.totalorder (!%p1373_p0), %s1366_s21, 0 }
  0x61   : > { %206 = sbr.rel (%p1373_p0) target bundleno = 1503 (0x5df), region = 36  ;;  %s697_s8 = sshll.u32 (!%p1373_p0), %s1244_s7, 4 }
  0x62   : > { %s209_s26 = scalar_lea.sflag (!%p1373_p0), [#allocation3], %s1244_s7  ;;  %s212_s10 = scalar_lea.vmem (!%p1373_p0), [#allocation2], %s697_s8 }
  0x68   : > { %1016 = dma.done.wait (%p1374_p5), %s209_s26, 256  }
  0x69   : > { %1018 = vsyncadd (%p1374_p5), %s209_s26, 4294967040  ;;  %p1375_p10 = scmp.eq.s32.totalorder %s1101_s19, 0 }
  0x6b   : > { %1020 = dma.done.wait (%p1375_p10), [#allocation6], 2048   ;;  %p1376_p11 = pmov %p1375_p10 }
  0x6c   : > { %v249_v0 = vld [vmem:[%s212_s10] sm:$0xff]  ;;  %v250_v1 = vld [vmem:[%s212_s10 + $0x8] sm:$0xff]  ;;  %v1050_v3 = vmov 0.0   ;;  %vm1051_vm0 = vmmov 0   ;;  %v274_v23 = vlaneseq  ;;  %s723_s27 = sshll.u32 %s1101_s19, 8  ;;  %s244_s30 = scalar_lea.vmem [#allocation8], %s697_s8 }
  0x6d   : > { %1022 = vsyncadd (%p1376_p11), [#allocation6], 4294965248  ;;  %251 = vadd.xlane.f32.xlu0 %v249_v0  ;;  %v857_v2 = vld [vmem:[#allocation5] sm:$0xff]   ;;  %742 = vmatprep.subr.bf16.mxu0 %v1050_v3  ;;  %v858_v12 = vld [vmem:[#allocation5 + $0x8] sm:$0xff]   ;;  %s596_s5 = sshll.u32 %s244_s30, 4  ;;  %s1313_s20 = scalar_lea.hbm %s1362_s4, %s723_s27  ;;  %s1315_s5 = int_to_ptr.vmem [resolvable:$true] %s596_s5 }
  0x6e   : > { %762 = vmatprep.subr.bf16.mxu1 %v1050_v3  ;;  %743 = vmatpush3.bf16.msra.mxu0 %v857_v2  ;;  %v859_v13 = vld [vmem:[#allocation5 + $0x10] sm:$0xff]   ;;  %v860_v14 = vld [vmem:[#allocation5 + $0x18] sm:$0xff]   ;;  %v861_v15 = vld [vmem:[#allocation5 + $0x20] sm:$0xff]   ;;  %v1269_v26 = vshrl.u32 %v274_v23, 7  ;;  %s583_s19 = scalar_lea.sflag [#allocation4], %s1244_s7  ;;  %s971_s28 = scalar_lea.vmem %s1315_s5, 256 }
  0x6f   : > { %744 = vmatprep.subr.bf16.mxu0 %v1050_v3  ;;  %758 = vmatprep.mubr.msk.bf16.mxu0 %vm1051_vm0, %v1050_v3  ;;  %v862_v16 = vld [vmem:[#allocation5 + $0x28] sm:$0xff]   ;;  %v863_v17 = vld [vmem:[#allocation5 + $0x30] sm:$0xff]   ;;  %v864_v18 = vld [vmem:[#allocation5 + $0x38] sm:$0xff]   ;;  %p972_p1 = scmp.ne.s32.totalorder %s1315_s5, %s971_s28  ;;  %s1052_s11 = smov [#allocation8]  }
  0x70   : > { %778 = vmatprep.mubr.msk.bf16.mxu1 %vm1051_vm0, %v1050_v3  ;;  %v276_v27 = vsub.s32 0, %v1269_v26  ;;  %v1275_v28 = vld [vmem:[%s1361_s3] sm:$0xff]  ;;  %v282_v32 = vsub.s32 1, %v1269_v26  ;;  %v305_v41 = vsub.s32 6, %v1269_v26  ;;  %v866_v58 = vld [vmem:[#allocation7 + $0x8] sm:$0xff]   ;;  %v867_v59 = vld [vmem:[#allocation7 + $0x10] sm:$0xff]  }
  0x71   : > { %253 = vadd.xlane.f32.xlu0 %v250_v1  ;;  %v865_v49 = vld [vmem:[#allocation7] sm:$0xff]   ;;  %v868_v60 = vld [vmem:[#allocation7 + $0x18] sm:$0xff]   ;;  %v870_v62 = vld [vmem:[#allocation7 + $0x28] sm:$0xff]   ;;  %p973_p2 = pnand %p972_p1, %p1192_p4  ;;  %s975_s12 = sshll.u32 %s1052_s11, 4  ;;  %s976_s12 = int_to_ptr.vmem [resolvable:$false] %s975_s12 }
  0x72   : > { %745 = vmatpush3.bf16.msra.mxu0 %v858_v12  ;;  %v277_v31 = vrot.slane %v1275_v28, %v276_v27  ;;  %v283_v36 = vrot.slane %v1275_v28, %v282_v32  ;;  %v306_v42 = vrot.slane %v1275_v28, %v305_v41  ;;  %763 = vmatpush3.bf16.msra.mxu1 %v865_v49  ;;  %v869_v61 = vld [vmem:[#allocation7 + $0x20] sm:$0xff]   ;;  %v871_v63 = vld [vmem:[#allocation7 + $0x30] sm:$0xff]   ;;  %v572_v49 = vsub.s32 5, %v1269_v26  ;;  %s977_s29 = scalar_lea.vmem %s976_s12, 512  ;;  %p978_p8 = scmp.lt.s32.totalorder %s1315_s5, %s976_s12 }
  0x73   : > { %746 = vmatprep.subr.bf16.mxu0 %v1050_v3  ;;  %764 = vmatprep.subr.bf16.mxu1 %v1050_v3  ;;  %p974_p6 = pneg %p973_p2  ;;  %p979_p13 = scmp.lt.s32.totalorder %s977_s29, %s971_s28 }
  0x75   : > { %p980_p3 = por %p979_p13, %p978_p8 }
  0x76   : > { %747 = vmatpush3.bf16.msra.mxu0 %v859_v13  ;;  %765 = vmatpush3.bf16.msra.mxu1 %v866_v58 }
  0x77   : > { %748 = vmatprep.subr.bf16.mxu0 %v1050_v3  ;;  %766 = vmatprep.subr.bf16.mxu1 %v1050_v3  ;;  %p981_p7 = pnand %p980_p3, %p974_p6 }
  0x7a   : > { %749 = vmatpush3.bf16.msra.mxu0 %v860_v14  ;;  %767 = vmatpush3.bf16.msra.mxu1 %v867_v59 }
  0x7b   : > { %750 = vmatprep.subr.bf16.mxu0 %v1050_v3  ;;  %768 = vmatprep.subr.bf16.mxu1 %v1050_v3 }
  0x7e   : > { %751 = vmatpush3.bf16.msra.mxu0 %v861_v15  ;;  %769 = vmatpush3.bf16.msra.mxu1 %v868_v60 }
  0x7f   : > { %752 = vmatprep.subr.bf16.mxu0 %v1050_v3  ;;  %770 = vmatprep.subr.bf16.mxu1 %v1050_v3 }
  0x82   : > { %753 = vmatpush3.bf16.msra.mxu0 %v862_v16  ;;  %771 = vmatpush3.bf16.msra.mxu1 %v869_v61 }
  0x83   : > { %754 = vmatprep.subr.bf16.mxu0 %v1050_v3  ;;  %772 = vmatprep.subr.bf16.mxu1 %v1050_v3 }
  0x86   : > { %755 = vmatpush3.bf16.msra.mxu0 %v863_v17  ;;  %773 = vmatpush3.bf16.msra.mxu1 %v870_v62 }
  0x87   : > { %756 = vmatprep.subr.bf16.mxu0 %v1050_v3  ;;  %774 = vmatprep.subr.bf16.mxu1 %v1050_v3 }
  0x8a   : > { %757 = vmatpush3.bf16.msra.mxu0 %v864_v18  ;;  %775 = vmatpush3.bf16.msra.mxu1 %v871_v63 }
  0x8b   : > { %776 = vmatprep.subr.bf16.mxu1 %v1050_v3 }
  0xfa   : > { %v252_v4 = vpop.xlane.xlu0 %251 }
  0xfb   : > { %v256_v5 = vmul.f32 0.0078125, %v252_v4 }
  0xfd   : > { %v258_v6 = vsub.f32 %v249_v0, %v256_v5  ;;  %v872_v0 = vld [vmem:[#allocation7 + $0x38] sm:$0xff]  }
  0xfe   : > { %v254_v7 = vpop.xlane.xlu0 %253  ;;  %777 = vmatpush3.bf16.msra.mxu1 %v872_v0 }
  0xff   : > { %v257_v8 = vmul.f32 0.0078125, %v254_v7  ;;  %v260_v9 = vmul.f32 %v258_v6, %v258_v6 }
 0x101   : > { %v259_v10 = vsub.f32 %v250_v1, %v257_v8  ;;  %262 = vadd.xlane.f32.xlu1 %v260_v9  ;;  %v420_v8 = vsub.s32 2, %v1269_v26  ;;  %v426_v9 = vsub.s32 3, %v1269_v26 }
 0x103   : > { %v261_v11 = vmul.f32 %v259_v10, %v259_v10  ;;  %v427_v13 = vrot.slane %v1275_v28, %v426_v9 }
 0x105   : > { %264 = vadd.xlane.f32.xlu1 %v261_v11 }
 0x18e   : > { %v263_v19 = vpop.xlane.xlu1 %262 }
 0x18f   : > { %v266_v20 = vmul.f32 0.0078125, %v263_v19 }
 0x191   : > { %v268_v21 = vadd.f32 1e-05, %v266_v20 }
 0x192   : > { %v265_v22 = vpop.xlane.xlu1 %264 }
 0x193   : > { %873 = vrsqrt.f32 %v268_v21  ;;  %v267_v24 = vmul.f32 0.0078125, %v265_v22  ;;  %v451_v22 = vsub.s32 7, %v1269_v26 }
 0x195   : > { %v269_v25 = vadd.f32 1e-05, %v267_v24  ;;  %v452_v23 = vrot.slane %v1275_v28, %v451_v22 }
 0x197   : > { %875 = vrsqrt.f32 %v269_v25 }
 0x19d   : > { %v874_v29 = vpop.eup %873 }
 0x19e   : > { %v272_v30 = vmul.f32 %v874_v29, %v258_v6 }
 0x1a0   : > { %v278_v35 = vmul.f32 %v277_v31, %v272_v30 }
 0x1a1   : > { %v876_v33 = vpop.eup %875 }
 0x1a2   : > { %v273_v34 = vmul.f32 %v876_v33, %v259_v10  ;;  %v1280_v38 = vadd.f32 %v283_v36, %v278_v35  ;;  %v421_v10 = vrot.slane %v1275_v28, %v420_v8 }
 0x1a4   : > { %v279_v37 = vmul.f32 %v277_v31, %v273_v34 }
 0x1a6   : > { %v1282_v39 = vadd.f32 %v283_v36, %v279_v37 }
 0x1a8   : > { %v286_v40 = vpack.c.bf16 %v1282_v39, %v1280_v38 }
 0x1aa   : > { %759 = vmatmul.mubr.bf16.vlgmr.msra.gmra.mrb[0].mxu0 %v286_v40 }
 0x27d   : > { %v389_v43 = vpop.f32.mrb[0].mxu0 }
 0x27e   : > { %v390_v44 = vadd.f32 %v389_v43, %v306_v42  ;;  %v760_v45 = vpop.f32.mrb[1].mxu0 }
 0x27f   : > { %v392_v46 = vpop.f32.mrb[2].mxu0 }
 0x280   : > { %v393_v47 = vadd.f32 %v392_v46, %v306_v42  ;;  %396 = vadd.xlane.f32.xlu0 %v390_v44  ;;  %v761_v48 = vpop.f32.mrb[3].mxu0 }
 0x281   : > { %v566_v48 = vsub.s32 4, %v1269_v26 }
 0x282   : > { %398 = vadd.xlane.f32.xlu1 %v393_v47 }
 0x30d   : > { %v397_v50 = vpop.xlane.xlu0 %396 }
 0x30e   : > { %v400_v51 = vmul.f32 0.0078125, %v397_v50  ;;  %v567_v50 = vrot.slane %v1275_v28, %v566_v48 }
 0x30f   : > { %v399_v52 = vpop.xlane.xlu1 %398 }
 0x310   : > { %v402_v53 = vsub.f32 %v390_v44, %v400_v51  ;;  %v401_v54 = vmul.f32 0.0078125, %v399_v52  ;;  %v573_v52 = vrot.slane %v1275_v28, %v572_v49 }
 0x312   : > { %v403_v55 = vsub.f32 %v393_v47, %v401_v54  ;;  %v404_v56 = vmul.f32 %v402_v53, %v402_v53 }
 0x314   : > { %406 = vadd.xlane.f32.xlu0 %v404_v56  ;;  %v405_v57 = vmul.f32 %v403_v55, %v403_v55 }
 0x316   : > { %408 = vadd.xlane.f32.xlu1 %v405_v57 }
 0x3a1   : > { %v407_v1 = vpop.xlane.xlu0 %406 }
 0x3a2   : > { %v410_v2 = vmul.f32 0.0078125, %v407_v1 }
 0x3a3   : > { %v409_v4 = vpop.xlane.xlu1 %408 }
 0x3a4   : > { %v412_v5 = vadd.f32 1e-05, %v410_v2  ;;  %v411_v6 = vmul.f32 0.0078125, %v409_v4 }
 0x3a6   : > { %877 = vrsqrt.f32 %v412_v5  ;;  %v413_v7 = vadd.f32 1e-05, %v411_v6 }
 0x3a8   : > { %879 = vrsqrt.f32 %v413_v7 }
 0x3b0   : > { %v878_v11 = vpop.eup %877 }
 0x3b1   : > { %v416_v12 = vmul.f32 %v878_v11, %v402_v53 }
 0x3b2   : > { %v880_v3 = vpop.eup %879 }
 0x3b3   : > { %v417_v14 = vmul.f32 %v880_v3, %v403_v55  ;;  %v422_v15 = vmul.f32 %v421_v10, %v416_v12 }
 0x3b5   : > { %v423_v16 = vmul.f32 %v421_v10, %v417_v14  ;;  %v428_v17 = vadd.f32 %v427_v13, %v422_v15 }
 0x3b7   : > { %v429_v18 = vadd.f32 %v427_v13, %v423_v16  ;;  %v430_v19 = vmax.f32 %v428_v17, 0.0 }
 0x3b9   : > { %v431_v20 = vmax.f32 %v429_v18, 0.0 }
 0x3bb   : > { %v432_v21 = vpack.c.bf16 %v431_v20, %v430_v19 }
 0x3bd   : > { %779 = vmatmul.mubr.bf16.vlgmr.msra.gmra.mrb[0].mxu1 %v432_v21 }
 0x490   : > { %v535_v24 = vpop.f32.mrb[0].mxu1 }
 0x491   : > { %v536_v25 = vadd.f32 %v535_v24, %v452_v23  ;;  %v780_v27 = vpop.f32.mrb[1].mxu1 }
 0x492   : > { %v538_v29 = vpop.f32.mrb[2].mxu1 }
 0x493   : > { %v539_v30 = vadd.f32 %v538_v29, %v452_v23  ;;  %542 = vadd.xlane.f32.xlu0 %v536_v25  ;;  %v781_v31 = vpop.f32.mrb[3].mxu1 }
 0x495   : > { %544 = vadd.xlane.f32.xlu1 %v539_v30 }
 0x520   : > { %v543_v32 = vpop.xlane.xlu0 %542 }
 0x521   : > { %v546_v33 = vmul.f32 0.0078125, %v543_v32 }
 0x522   : > { %v545_v34 = vpop.xlane.xlu1 %544 }
 0x523   : > { %v548_v35 = vsub.f32 %v536_v25, %v546_v33  ;;  %v547_v36 = vmul.f32 0.0078125, %v545_v34 }
 0x525   : > { %v549_v37 = vsub.f32 %v539_v30, %v547_v36  ;;  %v550_v40 = vmul.f32 %v548_v35, %v548_v35 }
 0x527   : > { %552 = vadd.xlane.f32.xlu0 %v550_v40  ;;  %v551_v41 = vmul.f32 %v549_v37, %v549_v37 }
 0x529   : > { %554 = vadd.xlane.f32.xlu1 %v551_v41 }
 0x5b4   : > { %v553_v42 = vpop.xlane.xlu0 %552 }
 0x5b5   : > { %v556_v43 = vmul.f32 0.0078125, %v553_v42 }
 0x5b6   : > { %v555_v44 = vpop.xlane.xlu1 %554 }
 0x5b7   : > { %v558_v45 = vadd.f32 1e-05, %v556_v43  ;;  %v557_v46 = vmul.f32 0.0078125, %v555_v44 }
 0x5b9   : > { %881 = vrsqrt.f32 %v558_v45  ;;  %v559_v47 = vadd.f32 1e-05, %v557_v46 }
 0x5bb   : > { %883 = vrsqrt.f32 %v559_v47 }
 0x5c3   : > { %v882_v51 = vpop.eup %881 }
 0x5c4   : > { %v562_v53 = vmul.f32 %v882_v51, %v548_v35 }
 0x5c5   : > { %v884_v54 = vpop.eup %883 }
 0x5c6   : > { %v568_v55 = vmul.f32 %v567_v50, %v562_v53  ;;  %v563_v56 = vmul.f32 %v884_v54, %v549_v37 }
 0x5c8   : > { %v574_v57 = vadd.f32 %v573_v52, %v568_v55  ;;  %v569_v58 = vmul.f32 %v567_v50, %v563_v56 }
 0x5ca   : > { %v576_v59 = vadd.f32 %v574_v57, %v1280_v38  ;;  %v575_v60 = vadd.f32 %v573_v52, %v569_v58 }
 0x5cc   : > { %v578_v26 = vmax.f32 %v576_v59, 0.0  ;;  %v577_v61 = vadd.f32 %v575_v60, %v1282_v39 }
 0x5ce   : > { %v579_v28 = vmax.f32 %v577_v61, 0.0  ;;  %580 = vst [vmem:[%s244_s30] sm:$0xff] %v578_v26 }
 0x5d0   : > { %581 = vst [vmem:[%s244_s30 + $0x8] sm:$0xff] %v579_v28 }
 0x5d1   : > { %984 = shalt.err (!%p981_p7)
}
 0x5d2   : > { %s985_s25 = scalar_lea.hbm %s1313_s20, 256  ;;  %s989_s10 = scalar_lea.hbm %s1362_s4, 1024 }
 0x5d3   : > { %p986_p9 = scmp.ne.s32.totalorder %s1313_s20, %s985_s25  ;;  %p990_p5 = scmp.lt.u32.totalorder %s1313_s20, %s1362_s4 }
 0x5d4   : > { %p991_p10 = scmp.lt.u32.totalorder %s989_s10, %s985_s25  ;;  %p993_p1 = scmp.lt.u32.totalorder %s985_s25, %s1313_s20 }
 0x5d5   : > { %p987_p12 = pnand %p986_p9, %p1192_p4 }
 0x5d6   : > { %p992_p11 = por %p991_p10, %p990_p5 }
 0x5d7   : > { %p988_p0 = pneg %p987_p12 }
 0x5d8   : > { %p994_p2 = por %p993_p1, %p992_p11 }
 0x5da   : > { %p995_p6 = pnand %p994_p2, %p988_p0 }
 0x5dc   : > { %998 = shalt.err (!%p995_p6)
}
 0x5dd   : > { %s1053_s27 = smov 128   ;;  %s1054_s30 = smov 8  }
 0x5de   : > { %792 = dma.vmem_to_hbm [thread:$0]  (%p1192_p4), %s1315_s5, 256, %s1313_s20, %s583_s19, %s1053_s27, %s1053_s27, %s1054_s30  }
 0x5df PF: > { %p814_p8 = scmp.ge.s32.totalorder %s1041_s18, 2  ;;  %s611_s6 = sand.u32 1, %s1029_s15  }
 0x5e0   : > { %p1377_p13 = scmp.ne.s32.totalorder %s1367_s22, 0  ;;  %s612_s24 = scalar_lea.sflag [#allocation4], %s611_s6 }
 0x5e2   : > { %p806_p3 = pnand %p814_p8, %p1377_p13 }
 0x5e4   : > { %1024 = dma.done.wait (!%p806_p3), %s612_s24, 256  }
 0x5e5   : > { %1026 = vsyncadd (!%p806_p3), %s612_s24, 4294967040  ;;  %p18_p7 = scmp.ge.s32.totalorder %s1182_s9, 6   ;;  %s1378_s15 = smov %s1033_s16 }
 0x5e6   : > { %s1379_s16 = smov %s1037_s17  ;;  %s1380_s17 = smov %s1198_s14 }
 0x5e7   : > { %s1381_s18 = smov %s1182_s9  ;;  %20 = sbr.rel (!%p18_p7) target bundleno = 6 (0x6), region = 89 }
 0x5ee   :  { %617 = vsyncpa [#allocation3], 1 }
 0x5ef   :  { %619 = vsyncpa [#allocation3 + $0x1], 1 }
 0x5f0   :  { %620 = vsyncpa [#allocation6], 1 }
 0x5f1   :  { %621 = vsyncpa [#allocation4], 1 }
 0x5f2   :  { %623 = vsyncpa [#allocation4 + $0x1], 1 }

</bundles_post_ra>
